<compile_context>
chip_gen: v6e
topology: v6e:2x2x1
jax: 0.10.0
libtpu: 0.0.40
codegen_flags: <defaults>
</compile_context>

<pallas_src>
import functools
import math

import numpy as np
import jax
import jax.numpy as jnp
from jax import lax
from jax.experimental import pallas as pl
from jax.experimental.pallas import tpu as pltpu


# --------------------------------------------------------------------------- #
# Kernel
# --------------------------------------------------------------------------- #
def _bottleneck_kernel(x_ref, a1_ref, b1_ref, a2_ref, b2_ref, out_ref, *, h, add):
    """Fused Bottleneck on one block of `nb` stacked images.

    Layout: row = (n, y), lane = x*C + c, i.e. slabs of shape (nb*H, W*C).
      x_ref  : (nbh, W*C1)         bf16  lane-dense input
      a*_ref : (3, W*Cin, W*Cout)  bf16  band weights (dx taps + width padding
                                         + channel padding + BN scale folded)
      b*_ref : (1, W*Cout)         f32   folded BatchNorm bias (tiled per x)
      out_ref: (nbh, W*C2)         bf16  lane-dense output
    """
    x32 = x_ref[...].astype(jnp.float32)          # (nbh, W*C1)
    nbh = x32.shape[0]
    wdtype = a1_ref.dtype

    # Image-boundary 0/1 multipliers for the +/-1 row shifts: rows are nb
    # stacked h-row images and pltpu.roll wraps across image/block edges, so
    # the wrapped rows are zeroed (= the conv's zero padding in y).
    row = lax.broadcasted_iota(jnp.int32, (nbh, 1), 0)
    keep_up = ((row % h) != 0).astype(jnp.float32)          # zero at image top
    keep_dn = ((row % h) != (h - 1)).astype(jnp.float32)    # zero at image bottom

    def conv3x3(v32, a_ref):
        # v32: (nbh, W*Cin) f32 ; a_ref: (3, W*Cin, W*Cout) bf16.
        # dy shifts via XLU sublane roll (f32 rotate path) + 0/1 mask.
        v_up = pltpu.roll(v32, shift=1, axis=0) * keep_up         # v[i-1]
        v_dn = pltpu.roll(v32, shift=nbh - 1, axis=0) * keep_dn   # v[i+1]
        acc = jnp.dot(v_up.astype(wdtype), a_ref[0], preferred_element_type=jnp.float32)
        acc = acc + jnp.dot(v32.astype(wdtype), a_ref[1], preferred_element_type=jnp.float32)
        acc = acc + jnp.dot(v_dn.astype(wdtype), a_ref[2], preferred_element_type=jnp.float32)
        return acc                                 # f32, (nbh, W*Cout)

    # cv1: conv3x3 (BN scale folded) -> +bias -> SiLU
    y1 = conv3x3(x32, a1_ref) + b1_ref[...]
    y1 = y1 * jax.nn.sigmoid(y1)

    # cv2: conv3x3 (BN scale folded) -> +bias -> SiLU
    y2 = conv3x3(y1, a2_ref) + b2_ref[...]
    y2 = y2 * jax.nn.sigmoid(y2)

    # residual add (shortcut and c1 == c2), same lane-dense layout
    if add:
        y2 = y2 + x32

    out_ref[...] = y2.astype(out_ref.dtype)        # unmasked 128-lane stores


# --------------------------------------------------------------------------- #
# Wrapper-side parameter transforms (done ONCE per weight set)
# --------------------------------------------------------------------------- #
def _pad_hidden_channels(ch, width, lane=128):
    """Smallest ch' >= ch with width*ch' % lane == 0 (keeps the intermediate
    activation lane-dense); skip if it would more than double the channels."""
    g = math.gcd(width, lane)
    step = lane // g
    ch_p = -(-ch // step) * step
    return ch_p if ch_p <= 2 * ch else ch


def _band_matrices(w_hwio, bn_scale, width, cin_pad, cout_pad, dtype):
    """w_hwio: (3, 3, Cin, Cout) -> (3, width*cin_pad, width*cout_pad).

    band[dy][xi*Cin+ci, xo*Cout+co] = bn_scale[co] * w[dy, xi-xo+1, ci, co] for
    |xi-xo| <= 1 else 0, i.e. the 3 dx taps, the width zero padding, the
    channel zero padding and the folded BN scale are all baked into one
    lane-dense matmul operand per kernel row dy.
    """
    cin, cout = w_hwio.shape[2], w_hwio.shape[3]
    wf = w_hwio.astype(jnp.float32) * bn_scale.astype(jnp.float32)[None, None, None, :]
    wf = jnp.pad(wf, ((0, 0), (0, 0), (0, cin_pad - cin), (0, cout_pad - cout)))
    bands = []
    for dy in range(3):
        m = sum(jnp.kron(jnp.eye(width, width, k=1 - dx, dtype=jnp.float32), wf[dy, dx])
                for dx in range(3))
        bands.append(m)
    return jnp.stack(bands).astype(dtype)


def _bias_row(bn_bias, width, c_pad):
    b = jnp.pad(bn_bias.astype(jnp.float32), (0, c_pad - bn_bias.shape[0]))
    return jnp.tile(b, (width,)).reshape(1, width * c_pad)


# --------------------------------------------------------------------------- #
# Public entry point: prepare once, return a jitted NHWC -> NHWC forward fn
# --------------------------------------------------------------------------- #
def make_bottleneck_fn(params, *, n, h, w, c1, shortcut=True,
                       compute_dtype=jnp.bfloat16, out_dtype=jnp.bfloat16,
                       nb=None):
    w1, s1, b1, w2, s2, b2 = params
    ch, c2 = w1.shape[-1], w2.shape[-1]
    add = bool(shortcut and c1 == c2)

    chp = _pad_hidden_channels(ch, w)                        # lane-dense y1
    a1 = _band_matrices(w1, s1, w, c1, chp, compute_dtype)   # (3, W*C1, W*CHp)
    a2 = _band_matrices(w2, s2, w, chp, c2, compute_dtype)   # (3, W*CHp, W*C2)
    b1t = _bias_row(b1, w, chp)                              # (1, W*CHp) f32
    b2t = _bias_row(b2, w, c2)                               # (1, W*C2)  f32

    # >= 2 'parallel' grid steps so v7x's 2nd TensorCore gets work; keep the
    # per-block M (= nb*h rows) as large as possible otherwise.
    if nb is None:
        nb = n // 2 if (n >= 2 and n % 2 == 0) else n
    if (nb * h) % 8 != 0:        # keep blocks sublane-aligned
        nb = n
    nbh = nb * h

    wc1, wch, wc2 = w * c1, w * chp, w * c2
    cost = pl.CostEstimate(
        flops=2 * 3 * n * h * (wc1 * wch + wch * wc2),
        transcendentals=n * h * (wch + wc2),
        bytes_accessed=(n * h * wc1 * 2
                        + 3 * (wc1 * wch + wch * wc2) * 2
                        + (wch + wc2) * 4
                        + n * h * wc2 * jnp.dtype(out_dtype).itemsize),
    )

    kernel = functools.partial(_bottleneck_kernel, h=h, add=add)
    # Grid-invariant operands (bands, biases) have constant index maps, so the
    # pipeline fetches them once and re-uses the same VMEM buffer per step.
    call = pl.pallas_call(
        kernel,
        out_shape=jax.ShapeDtypeStruct((n * h, wc2), out_dtype),
        grid=(n // nb,),
        in_specs=[
            pl.BlockSpec((nbh, wc1), lambda b: (b, 0)),          # x (lane-dense)
            pl.BlockSpec((3, wc1, wch), lambda b: (0, 0, 0)),    # cv1 bands
            pl.BlockSpec((1, wch), lambda b: (0, 0)),            # cv1 bias
            pl.BlockSpec((3, wch, wc2), lambda b: (0, 0, 0)),    # cv2 bands
            pl.BlockSpec((1, wc2), lambda b: (0, 0)),            # cv2 bias
        ],
        out_specs=pl.BlockSpec((nbh, wc2), lambda b: (b, 0)),    # lane-dense out
        compiler_params=pltpu.CompilerParams(
            dimension_semantics=("parallel",)),
        cost_estimate=cost,
    )

    @jax.jit
    def forward(x_nhwc):
        # NHWC -> lane-dense (N*H, W*C1) is a pure reshape (c is already the
        # fastest axis): no transpose, no extra HBM round trip.
        x2d = x_nhwc.reshape(n * h, w * c1).astype(compute_dtype)
        y2d = call(x2d, a1, b1t, a2, b2t)
        return y2d.reshape(n, h, w, c2)

    return forward


# --------------------------------------------------------------------------- #
# Pure-JAX reference (XLA convs, NHWC) with matching mixed precision
# --------------------------------------------------------------------------- #
def bottleneck_ref_nhwc(x_nhwc, params, *, shortcut=True, compute_dtype=jnp.bfloat16):
    w1, s1, b1, w2, s2, b2 = params
    x = x_nhwc.astype(compute_dtype)

    def conv_bn_silu(inp, wgt, s, b):
        y = lax.conv_general_dilated(
            inp.astype(compute_dtype), wgt.astype(compute_dtype),
            window_strides=(1, 1), padding=((1, 1), (1, 1)),
            dimension_numbers=("NHWC", "HWIO", "NHWC"),
            preferred_element_type=jnp.float32)
        y = y * s.astype(jnp.float32) + b.astype(jnp.float32)
        return y * jax.nn.sigmoid(y)

    y = conv_bn_silu(conv_bn_silu(x, w1, s1, b1), w2, s2, b2)
    if shortcut and x.shape[-1] == y.shape[-1]:
        y = y + x.astype(jnp.float32)
    return y


# --------------------------------------------------------------------------- #
# Synthetic params (eval-mode BatchNorm running stats folded into scale/bias)
# --------------------------------------------------------------------------- #
def make_params(key, c1, c2, e=0.5, eps=1e-5):
    c_ = int(c2 * e)
    ks = jax.random.split(key, 10)

    def bn_fold(kg, kb, km, kv, c):
        gamma = 1.0 + 0.1 * jax.random.normal(kg, (c,), jnp.float32)
        beta = 0.1 * jax.random.normal(kb, (c,), jnp.float32)
        mean = 0.1 * jax.random.normal(km, (c,), jnp.float32)
        var = 0.5 + jax.random.uniform(kv, (c,), jnp.float32)
        scale = gamma / jnp.sqrt(var + eps)
        bias = beta - mean * scale
        return scale, bias

    w1 = 0.2 * jax.random.normal(ks[0], (3, 3, c1, c_), jnp.float32)  # HWIO
    w2 = 0.2 * jax.random.normal(ks[1], (3, 3, c_, c2), jnp.float32)  # HWIO
    s1, b1 = bn_fold(ks[2], ks[3], ks[4], ks[5], c_)
    s2, b2 = bn_fold(ks[6], ks[7], ks[8], ks[9], c2)
    return (w1, s1, b1, w2, s2, b2)


if __name__ == "__main__":
    key = jax.random.PRNGKey(0)
    kx, kp = jax.random.split(key)

    # Bottleneck(c1=8, c2=8, shortcut=True, g=1, k=(3,3), e=0.5) -> c_=4, add=True.
    # Activations stay channel-last (NHWC) across layers -> no per-layer
    # NCHW<->NHWC transposes around the kernel.
    N, C, H, W = 2, 8, 16, 16
    x_nhwc = jax.random.normal(kx, (N, H, W, C), jnp.float32)
    params = make_params(kp, C, C, e=0.5)

    fwd = make_bottleneck_fn(params, n=N, h=H, w=W, c1=C, shortcut=True)
    out = jax.block_until_ready(fwd(x_nhwc))

    ref = bottleneck_ref_nhwc(x_nhwc, params, shortcut=True)
    assert out.shape == (N, H, W, C)
    # Both paths use bf16 MXU inputs with f32 accumulation and an f32
    # bias/SiLU/residual epilogue; the kernel additionally folds the BN scale
    # into the bf16 weights and stores the output in bf16, so agreement is
    # expected at bf16 resolution.
    np.testing.assert_allclose(np.asarray(out.astype(jnp.float32)),
                               np.asarray(ref), atol=2e-2, rtol=2e-2)
    print("KERNEL_OK")
</pallas_src>

<mosaic_0001>
module attributes {stable_mosaic.version = 11 : i64} {
  func.func @_bottleneck_kernel(%arg0: i32, %arg1: memref<16x128xbf16, #tpu.memory_space<vmem>>, %arg2: memref<3x128x128xbf16, #tpu.memory_space<vmem>>, %arg3: memref<1x128xf32, #tpu.memory_space<vmem>>, %arg4: memref<3x128x128xbf16, #tpu.memory_space<vmem>>, %arg5: memref<1x128xf32, #tpu.memory_space<vmem>>, %arg6: memref<16x128xbf16, #tpu.memory_space<vmem>>) attributes {dimension_semantics = [#tpu.dimension_semantics<parallel>], iteration_bounds = array<i64: 2>, scalar_prefetch = 0 : i64, scratch_operands = 0 : i64, tpu.core_type = #tpu.core_type<tc>, window_params = [{transform_indices = @transform_0, window_bounds = array<i64: 16, 128>}, {pipeline_mode = #tpu.pipeline_mode<synchronous>, transform_indices = @transform_1, window_bounds = array<i64: 3, 128, 128>}, {pipeline_mode = #tpu.pipeline_mode<synchronous>, transform_indices = @transform_2, window_bounds = array<i64: 1, 128>}, {pipeline_mode = #tpu.pipeline_mode<synchronous>, transform_indices = @transform_3, window_bounds = array<i64: 3, 128, 128>}, {pipeline_mode = #tpu.pipeline_mode<synchronous>, transform_indices = @transform_4, window_bounds = array<i64: 1, 128>}, {transform_indices = @transform_5, window_bounds = array<i64: 16, 128>}]} {
    %c0 = arith.constant 0 : index
    %c0_0 = arith.constant 0 : index
    %0 = vector.load %arg1[%c0, %c0_0] : memref<16x128xbf16, #tpu.memory_space<vmem>>, vector<16x128xbf16>
    %1 = arith.extf %0 : vector<16x128xbf16> to vector<16x128xf32>
    %2 = tpu.iota {dimensions = array<i32: 0>} : vector<16x1xi32>
    %c16_i32 = arith.constant 16 : i32
    %c0_i32 = arith.constant 0 : i32
    %3 = arith.cmpi eq, %c16_i32, %c0_i32 : i32
    %c1_i32 = arith.constant 1 : i32
    %4 = arith.select %3, %c1_i32, %c16_i32 : i32
    %5 = vector.broadcast %4 : i32 to vector<16x1xi32>
    %6 = arith.remsi %2, %5 : vector<16x1xi32>
    %c0_i32_1 = arith.constant 0 : i32
    %7 = vector.broadcast %c0_i32_1 : i32 to vector<16x1xi32>
    %8 = arith.cmpi ne, %6, %7 : vector<16x1xi32>
    %c0_i32_2 = arith.constant 0 : i32
    %9 = vector.broadcast %c0_i32_2 : i32 to vector<16x1xi32>
    %10 = arith.cmpi slt, %6, %9 : vector<16x1xi32>
    %c0_i32_3 = arith.constant 0 : i32
    %11 = arith.cmpi slt, %4, %c0_i32_3 : i32
    %12 = vector.broadcast %11 : i1 to vector<16x1xi1>
    %13 = vector.broadcast %12 : vector<16x1xi1> to vector<16x1xi1>
    %14 = arith.xori %10, %13 : vector<16x1xi1>
    %15 = arith.andi %14, %8 : vector<16x1xi1>
    %16 = vector.broadcast %4 : i32 to vector<16x1xi32>
    %17 = arith.addi %6, %16 : vector<16x1xi32>
    %18 = arith.select %15, %17, %6 : vector<16x1xi1>, vector<16x1xi32>
    %c0_i32_4 = arith.constant 0 : i32
    %19 = vector.broadcast %c0_i32_4 : i32 to vector<16x1xi32>
    %20 = arith.cmpi ne, %18, %19 : vector<16x1xi32>
    %21 = arith.extui %20 : vector<16x1xi1> to vector<16x1xi32>
    %22 = arith.sitofp %21 : vector<16x1xi32> to vector<16x1xf32>
    %c16_i32_5 = arith.constant 16 : i32
    %c0_i32_6 = arith.constant 0 : i32
    %23 = arith.cmpi eq, %c16_i32_5, %c0_i32_6 : i32
    %c1_i32_7 = arith.constant 1 : i32
    %24 = arith.select %23, %c1_i32_7, %c16_i32_5 : i32
    %25 = vector.broadcast %24 : i32 to vector<16x1xi32>
    %26 = arith.remsi %2, %25 : vector<16x1xi32>
    %c0_i32_8 = arith.constant 0 : i32
    %27 = vector.broadcast %c0_i32_8 : i32 to vector<16x1xi32>
    %28 = arith.cmpi ne, %26, %27 : vector<16x1xi32>
    %c0_i32_9 = arith.constant 0 : i32
    %29 = vector.broadcast %c0_i32_9 : i32 to vector<16x1xi32>
    %30 = arith.cmpi slt, %26, %29 : vector<16x1xi32>
    %c0_i32_10 = arith.constant 0 : i32
    %31 = arith.cmpi slt, %24, %c0_i32_10 : i32
    %32 = vector.broadcast %31 : i1 to vector<16x1xi1>
    %33 = vector.broadcast %32 : vector<16x1xi1> to vector<16x1xi1>
    %34 = arith.xori %30, %33 : vector<16x1xi1>
    %35 = arith.andi %34, %28 : vector<16x1xi1>
    %36 = vector.broadcast %24 : i32 to vector<16x1xi32>
    %37 = arith.addi %26, %36 : vector<16x1xi32>
    %38 = arith.select %35, %37, %26 : vector<16x1xi1>, vector<16x1xi32>
    %c15_i32 = arith.constant 15 : i32
    %39 = vector.broadcast %c15_i32 : i32 to vector<16x1xi32>
    %40 = arith.cmpi ne, %38, %39 : vector<16x1xi32>
    %41 = arith.extui %40 : vector<16x1xi1> to vector<16x1xi32>
    %42 = arith.sitofp %41 : vector<16x1xi32> to vector<16x1xf32>
    %c1_i32_11 = arith.constant 1 : i32
    %43 = tpu.dynamic_rotate %1 by %c1_i32_11 dim 0 : vector<16x128xf32>, i32 -> vector<16x128xf32>
    %44 = vector.broadcast %22 : vector<16x1xf32> to vector<16x128xf32>
    %45 = arith.mulf %43, %44 : vector<16x128xf32>
    %c15_i32_12 = arith.constant 15 : i32
    %46 = tpu.dynamic_rotate %1 by %c15_i32_12 dim 0 : vector<16x128xf32>, i32 -> vector<16x128xf32>
    %47 = vector.broadcast %42 : vector<16x1xf32> to vector<16x128xf32>
    %48 = arith.mulf %46, %47 : vector<16x128xf32>
    %49 = arith.truncf %45 : vector<16x128xf32> to vector<16x128xbf16>
    %c0_13 = arith.constant 0 : index
    %c0_14 = arith.constant 0 : index
    %c0_15 = arith.constant 0 : index
    %50 = vector.load %arg2[%c0_13, %c0_14, %c0_15] : memref<3x128x128xbf16, #tpu.memory_space<vmem>>, vector<1x128x128xbf16>
    %51 = vector.shape_cast %50 : vector<1x128x128xbf16> to vector<128x128xbf16>
    %cst = arith.constant dense<0.000000e+00> : vector<16x128xf32>
    %52 = tpu.matmul %49, %51, %cst {dimension_numbers = #tpu.dot_dimension_numbers<[1], [0], [0], [1], [0, 0, 1, 1], [], []>} : vector<16x128xbf16>, vector<128x128xbf16>, vector<16x128xf32> -> vector<16x128xf32>
    %53 = arith.truncf %1 : vector<16x128xf32> to vector<16x128xbf16>
    %c1 = arith.constant 1 : index
    %c0_16 = arith.constant 0 : index
    %c0_17 = arith.constant 0 : index
    %54 = vector.load %arg2[%c1, %c0_16, %c0_17] : memref<3x128x128xbf16, #tpu.memory_space<vmem>>, vector<1x128x128xbf16>
    %55 = vector.shape_cast %54 : vector<1x128x128xbf16> to vector<128x128xbf16>
    %cst_18 = arith.constant dense<0.000000e+00> : vector<16x128xf32>
    %56 = tpu.matmul %53, %55, %cst_18 {dimension_numbers = #tpu.dot_dimension_numbers<[1], [0], [0], [1], [0, 0, 1, 1], [], []>} : vector<16x128xbf16>, vector<128x128xbf16>, vector<16x128xf32> -> vector<16x128xf32>
    %57 = arith.addf %52, %56 : vector<16x128xf32>
    %58 = arith.truncf %48 : vector<16x128xf32> to vector<16x128xbf16>
    %c2 = arith.constant 2 : index
    %c0_19 = arith.constant 0 : index
    %c0_20 = arith.constant 0 : index
    %59 = vector.load %arg2[%c2, %c0_19, %c0_20] : memref<3x128x128xbf16, #tpu.memory_space<vmem>>, vector<1x128x128xbf16>
    %60 = vector.shape_cast %59 : vector<1x128x128xbf16> to vector<128x128xbf16>
    %cst_21 = arith.constant dense<0.000000e+00> : vector<16x128xf32>
    %61 = tpu.matmul %58, %60, %cst_21 {dimension_numbers = #tpu.dot_dimension_numbers<[1], [0], [0], [1], [0, 0, 1, 1], [], []>} : vector<16x128xbf16>, vector<128x128xbf16>, vector<16x128xf32> -> vector<16x128xf32>
    %62 = arith.addf %57, %61 : vector<16x128xf32>
    %c0_22 = arith.constant 0 : index
    %c0_23 = arith.constant 0 : index
    %63 = vector.load %arg3[%c0_22, %c0_23] : memref<1x128xf32, #tpu.memory_space<vmem>>, vector<1x128xf32>
    %64 = vector.broadcast %63 : vector<1x128xf32> to vector<16x128xf32>
    %65 = arith.addf %62, %64 : vector<16x128xf32>
    %66 = arith.negf %65 : vector<16x128xf32>
    %67 = math.exp %66 : vector<16x128xf32>
    %cst_24 = arith.constant 1.000000e+00 : f32
    %68 = vector.broadcast %cst_24 : f32 to vector<16x128xf32>
    %69 = arith.addf %68, %67 : vector<16x128xf32>
    %70 = arith.divf %68, %69 : vector<16x128xf32>
    %71 = arith.mulf %65, %70 : vector<16x128xf32>
    %c1_i32_25 = arith.constant 1 : i32
    %72 = tpu.dynamic_rotate %71 by %c1_i32_25 dim 0 : vector<16x128xf32>, i32 -> vector<16x128xf32>
    %73 = vector.broadcast %22 : vector<16x1xf32> to vector<16x128xf32>
    %74 = arith.mulf %72, %73 : vector<16x128xf32>
    %c15_i32_26 = arith.constant 15 : i32
    %75 = tpu.dynamic_rotate %71 by %c15_i32_26 dim 0 : vector<16x128xf32>, i32 -> vector<16x128xf32>
    %76 = vector.broadcast %42 : vector<16x1xf32> to vector<16x128xf32>
    %77 = arith.mulf %75, %76 : vector<16x128xf32>
    %78 = arith.truncf %74 : vector<16x128xf32> to vector<16x128xbf16>
    %c0_27 = arith.constant 0 : index
    %c0_28 = arith.constant 0 : index
    %c0_29 = arith.constant 0 : index
    %79 = vector.load %arg4[%c0_27, %c0_28, %c0_29] : memref<3x128x128xbf16, #tpu.memory_space<vmem>>, vector<1x128x128xbf16>
    %80 = vector.shape_cast %79 : vector<1x128x128xbf16> to vector<128x128xbf16>
    %cst_30 = arith.constant dense<0.000000e+00> : vector<16x128xf32>
    %81 = tpu.matmul %78, %80, %cst_30 {dimension_numbers = #tpu.dot_dimension_numbers<[1], [0], [0], [1], [0, 0, 1, 1], [], []>} : vector<16x128xbf16>, vector<128x128xbf16>, vector<16x128xf32> -> vector<16x128xf32>
    %82 = arith.truncf %71 : vector<16x128xf32> to vector<16x128xbf16>
    %c1_31 = arith.constant 1 : index
    %c0_32 = arith.constant 0 : index
    %c0_33 = arith.constant 0 : index
    %83 = vector.load %arg4[%c1_31, %c0_32, %c0_33] : memref<3x128x128xbf16, #tpu.memory_space<vmem>>, vector<1x128x128xbf16>
    %84 = vector.shape_cast %83 : vector<1x128x128xbf16> to vector<128x128xbf16>
    %cst_34 = arith.constant dense<0.000000e+00> : vector<16x128xf32>
    %85 = tpu.matmul %82, %84, %cst_34 {dimension_numbers = #tpu.dot_dimension_numbers<[1], [0], [0], [1], [0, 0, 1, 1], [], []>} : vector<16x128xbf16>, vector<128x128xbf16>, vector<16x128xf32> -> vector<16x128xf32>
    %86 = arith.addf %81, %85 : vector<16x128xf32>
    %87 = arith.truncf %77 : vector<16x128xf32> to vector<16x128xbf16>
    %c2_35 = arith.constant 2 : index
    %c0_36 = arith.constant 0 : index
    %c0_37 = arith.constant 0 : index
    %88 = vector.load %arg4[%c2_35, %c0_36, %c0_37] : memref<3x128x128xbf16, #tpu.memory_space<vmem>>, vector<1x128x128xbf16>
    %89 = vector.shape_cast %88 : vector<1x128x128xbf16> to vector<128x128xbf16>
    %cst_38 = arith.constant dense<0.000000e+00> : vector<16x128xf32>
    %90 = tpu.matmul %87, %89, %cst_38 {dimension_numbers = #tpu.dot_dimension_numbers<[1], [0], [0], [1], [0, 0, 1, 1], [], []>} : vector<16x128xbf16>, vector<128x128xbf16>, vector<16x128xf32> -> vector<16x128xf32>
    %91 = arith.addf %86, %90 : vector<16x128xf32>
    %c0_39 = arith.constant 0 : index
    %c0_40 = arith.constant 0 : index
    %92 = vector.load %arg5[%c0_39, %c0_40] : memref<1x128xf32, #tpu.memory_space<vmem>>, vector<1x128xf32>
    %93 = vector.broadcast %92 : vector<1x128xf32> to vector<16x128xf32>
    %94 = arith.addf %91, %93 : vector<16x128xf32>
    %95 = arith.negf %94 : vector<16x128xf32>
    %96 = math.exp %95 : vector<16x128xf32>
    %cst_41 = arith.constant 1.000000e+00 : f32
    %97 = vector.broadcast %cst_41 : f32 to vector<16x128xf32>
    %98 = arith.addf %97, %96 : vector<16x128xf32>
    %99 = arith.divf %97, %98 : vector<16x128xf32>
    %100 = arith.mulf %94, %99 : vector<16x128xf32>
    %101 = arith.addf %100, %1 : vector<16x128xf32>
    %102 = arith.truncf %101 : vector<16x128xf32> to vector<16x128xbf16>
    %c0_42 = arith.constant 0 : index
    %c0_43 = arith.constant 0 : index
    %103 = vector.load %arg6[%c0_42, %c0_43] : memref<16x128xbf16, #tpu.memory_space<vmem>>, vector<16x128xbf16>
    tpu.vector_store %arg6[%c0_42, %c0_43], %102 {strides = array<i32>} : memref<16x128xbf16, #tpu.memory_space<vmem>>, vector<16x128xbf16>,
    return
  }
  func.func @transform_0(%arg0: i32) -> (i32, i32) {
    %c0_i32 = arith.constant 0 : i32
    %c0_i32_0 = arith.constant 0 : i32
    return %arg0, %c0_i32 : i32, i32
  }
  func.func @transform_1(%arg0: i32) -> (i32, i32, i32) {
    %c0_i32 = arith.constant 0 : i32
    %c0_i32_0 = arith.constant 0 : i32
    %c0_i32_1 = arith.constant 0 : i32
    %c0_i32_2 = arith.constant 0 : i32
    return %c0_i32, %c0_i32_0, %c0_i32_1 : i32, i32, i32
  }
  func.func @transform_2(%arg0: i32) -> (i32, i32) {
    %c0_i32 = arith.constant 0 : i32
    %c0_i32_0 = arith.constant 0 : i32
    %c0_i32_1 = arith.constant 0 : i32
    return %c0_i32, %c0_i32_0 : i32, i32
  }
  func.func @transform_3(%arg0: i32) -> (i32, i32, i32) {
    %c0_i32 = arith.constant 0 : i32
    %c0_i32_0 = arith.constant 0 : i32
    %c0_i32_1 = arith.constant 0 : i32
    %c0_i32_2 = arith.constant 0 : i32
    return %c0_i32, %c0_i32_0, %c0_i32_1 : i32, i32, i32
  }
  func.func @transform_4(%arg0: i32) -> (i32, i32) {
    %c0_i32 = arith.constant 0 : i32
    %c0_i32_0 = arith.constant 0 : i32
    %c0_i32_1 = arith.constant 0 : i32
    return %c0_i32, %c0_i32_0 : i32, i32
  }
  func.func @transform_5(%arg0: i32) -> (i32, i32) {
    %c0_i32 = arith.constant 0 : i32
    %c0_i32_0 = arith.constant 0 : i32
    return %arg0, %c0_i32 : i32, i32
  }
}

</mosaic_0001>

<bundles_post_ra>
// kernel: forward.1
= control target key start
LH: loop header
LB: loop body
LE: loop exit
PB: predicated region body
PF: predicated region fallthrough
CT: control target
= control target key end

     0   :  { %s1492_s18 = smov 0   ;;  %s1768_s0 = inlined_call_operand.vmem [shape: bf16[32,128], index: 0, kind: input, shape index: {}]   ;;  %s1769_s1 = inlined_call_operand.vmem [shape: bf16[3,128,128], index: 1, kind: input, shape index: {}]   ;;  %s1770_s2 = inlined_call_operand.vmem [shape: f32[1,128], index: 2, kind: input, shape index: {}]   ;;  %s1771_s3 = inlined_call_operand.vmem [shape: bf16[3,128,128], index: 3, kind: input, shape index: {}]   ;;  %s1772_s4 = inlined_call_operand.vmem [shape: f32[1,128], index: 4, kind: input, shape index: {}]   ;;  %s1773_s5 = inlined_call_operand.vmem [shape: bf16[32,128], index: 5, kind: output, shape index: {}]  }
   0x1 LB: > { %s1061_s19 = sadd.s32 4294967295, %s1458_s18   ;;  %p1065_p0 = scmp.ge.s32.totalorder %s1458_s18, 1  ;;  %s1458_s18 = sphi %s1492_s18, %s15_s18  }
   0x2   : > { %p188_p1 = scmp.lt.s32.totalorder %s1458_s18, 3 }
   0x4   : > { %p189_p2 = pnand %p1065_p0, %p188_p1 }
   0x5   : > { %s1066_s26 = sshll.u32 (!%p189_p2), %s1061_s19, 1 }
   0x6   : > { %192 = sbr.rel (%p189_p2) target bundleno = 585 (0x249), region = 40  ;;  %p217_p3 = scmp.lt.s32.totalorder (!%p189_p2), %s1066_s26, 3 }
   0xb   : > { %v1386_v0 = vld [vmem:[%s1769_s1 + $0x78] sm:$0xff]   ;;  %v1460_v1 = vmov 0.0   ;;  %v1388_v3 = vld [vmem:[%s1769_s1 + $0x70] sm:$0xff]   ;;  %vm1461_vm0 = vmmov 0   ;;  %v1390_v5 = vld [vmem:[%s1769_s1 + $0x68] sm:$0xff]   ;;  %s1775_s26 = smov (!%p217_p3, %s1066_s26), 3  ;;  %v233_v7 = vlaneseq }
   0xc   : > { %1256 = vmatprep.subr.bf16.mxu0 %v1460_v1  ;;  %1276 = vmatprep.subr.bf16.mxu1 %v1460_v1  ;;  %v1387_v2 = vld [vmem:[%s1769_s1 + $0x38] sm:$0xff]   ;;  %v1389_v4 = vld [vmem:[%s1769_s1 + $0x30] sm:$0xff]   ;;  %v1391_v6 = vld [vmem:[%s1769_s1 + $0x28] sm:$0xff]   ;;  %s1067_s10 = sshll.u32 %s1775_s26, 2 }
   0xd   : > { %1257 = vmatpush3.bf16.msra.mxu0 %v1386_v0  ;;  %1272 = vmatprep.mubr.msk.bf16.mxu0 %vm1461_vm0, %v1460_v1  ;;  %v1392_v8 = vld [vmem:[%s1769_s1 + $0x60] sm:$0xff]   ;;  %v1538_v10 = vshrl.u32 %v233_v7, 7  ;;  %s220_s15 = scalar_lea.vmem %s1768_s0, %s1067_s10  ;;  %v1394_v11 = vld [vmem:[%s1769_s1 + $0x58] sm:$0xff]   ;;  %v1396_v17 = vld [vmem:[%s1769_s1 + $0x50] sm:$0xff]   ;;  %s226_s14 = scalar_lea.vmem %s1773_s5, %s1067_s10 }
   0xe   : > { %1277 = vmatpush3.bf16.msra.mxu1 %v1387_v2  ;;  %1258 = vmatprep.subr.bf16.mxu0 %v1460_v1  ;;  %v1393_v9 = vld [vmem:[%s1769_s1 + $0x20] sm:$0xff]   ;;  %v1395_v12 = vld [vmem:[%s1769_s1 + $0x18] sm:$0xff]   ;;  %v1397_v18 = vld [vmem:[%s1769_s1 + $0x10] sm:$0xff]  }
   0xf   : > { %1278 = vmatprep.subr.bf16.mxu1 %v1460_v1  ;;  %1292 = vmatprep.mubr.msk.bf16.mxu1 %vm1461_vm0, %v1460_v1  ;;  %v240_v13 = vand.u32 15, %v1538_v10  ;;  %v229_v14 = vld [vmem:[%s220_s15] sm:$0xff]   ;;  %vm274_vm2 = vcmp.lt.s32.totalorder %v1538_v10, 1  ;;  %v1398_v21 = vld [vmem:[%s1769_s1 + $0x48] sm:$0xff]   ;;  %v1403_v29 = vld [vmem:[%s1769_s1 + $0xb8] sm:$0xff]   ;;  %v235_v34 = vadd.s32 8, %v1538_v10 }
  0x10   : > { %v1555_v15 = vunpack.c.l.bf16 %v229_v14  ;;  %v1557_v16 = vunpack.c.h.bf16 %v229_v14  ;;  %v1399_v22 = vld [vmem:[%s1769_s1 + $0x8] sm:$0xff]   ;;  %v1400_v25 = vld [vmem:[%s1769_s1 + $0x40] sm:$0xff]   ;;  %v1404_v31 = vld [vmem:[%s1769_s1 + $0xb0] sm:$0xff]   ;;  %vm281_vm4 = vcmp.lt.s32.totalorder %v1538_v10, 7 }
  0x11   : > { %1259 = vmatpush3.bf16.msra.mxu0 %v1388_v3  ;;  %vm260_vm1 = vcmp.ne.s32.totalorder %v240_v13, 0  ;;  %v1401_v26 = vld [vmem:[%s1769_s1] sm:$0xff]   ;;  %v1405_v32 = vld [vmem:[%s1769_s1 + $0xa8] sm:$0xff]   ;;  %v1407_v35 = vld [vmem:[%s1769_s1 + $0x98] sm:$0xff]   ;;  %v247_v36 = vand.u32 15, %v235_v34 }
  0x12   : > { %1279 = vmatpush3.bf16.msra.mxu1 %v1389_v4  ;;  %1260 = vmatprep.subr.bf16.mxu0 %v1460_v1  ;;  %v272_v19 = vrot.slane %v1555_v15, 7  ;;  %v273_v20 = vrot.slane %v1557_v16, 7  ;;  %v1578_v23 = vsel %vm260_vm1, 1.0, %v1460_v1  ;;  %v1406_v33 = vld [vmem:[%s1769_s1 + $0xa0] sm:$0xff]   ;;  %v279_v37 = vrot.slane %v1555_v15, 1  ;;  %v1408_v39 = vld [vmem:[%s1769_s1 + $0x90] sm:$0xff]  }
  0x13   : > { %1280 = vmatprep.subr.bf16.mxu1 %v1460_v1  ;;  %v280_v38 = vrot.slane %v1557_v16, 1  ;;  %vm267_vm3 = vcmp.ne.s32.totalorder %v247_v36, 15  ;;  %v1409_v40 = vld [vmem:[%s1769_s1 + $0x88] sm:$0xff]   ;;  %v1410_v44 = vld [vmem:[%s1769_s1 + $0x80] sm:$0xff]   ;;  %v1411_v47 = vld [vmem:[%s1771_s3 + $0x78] sm:$0xff]  }
  0x14   : > { %v276_v24 = vsel %vm274_vm2, %v273_v20, %v272_v19  ;;  %v275_v28 = vsel %vm274_vm2, %v272_v19, %v273_v20  ;;  %v1631_v41 = vsel %vm267_vm3, 1.0, %v1460_v1  ;;  %v1412_v48 = vld [vmem:[%s1771_s3 + $0x70] sm:$0xff]   ;;  %v1413_v49 = vld [vmem:[%s1771_s3 + $0x38] sm:$0xff]   ;;  %v1414_v50 = vld [vmem:[%s1771_s3 + $0x68] sm:$0xff]  }
  0x15   : > { %1261 = vmatpush3.bf16.msra.mxu0 %v1390_v5  ;;  %v277_v27 = vmul.f32 %v1578_v23, %v276_v24  ;;  %v283_v42 = vsel %vm281_vm4, %v280_v38, %v279_v37  ;;  %v282_v45 = vsel %vm281_vm4, %v279_v37, %v280_v38  ;;  %v1415_v51 = vld [vmem:[%s1771_s3 + $0x30] sm:$0xff]   ;;  %v1416_v52 = vld [vmem:[%s1771_s3 + $0x60] sm:$0xff]   ;;  %v1417_v53 = vld [vmem:[%s1771_s3 + $0x28] sm:$0xff]  }
  0x16   : > { %1281 = vmatpush3.bf16.msra.mxu1 %v1391_v6  ;;  %1262 = vmatprep.subr.bf16.mxu0 %v1460_v1  ;;  %v285_v43 = vmul.f32 %v1631_v41, %v283_v42  ;;  %v1418_v54 = vld [vmem:[%s1771_s3 + $0x58] sm:$0xff]   ;;  %v1419_v55 = vld [vmem:[%s1771_s3 + $0x20] sm:$0xff]   ;;  %v1420_v56 = vld [vmem:[%s1771_s3 + $0x50] sm:$0xff]  }
  0x17   : > { %1282 = vmatprep.subr.bf16.mxu1 %v1460_v1  ;;  %v286_v30 = vpack.c.bf16 %v275_v28, %v277_v27  ;;  %v1421_v57 = vld [vmem:[%s1771_s3 + $0x18] sm:$0xff]   ;;  %v1422_v58 = vld [vmem:[%s1771_s3 + $0x48] sm:$0xff]   ;;  %v1423_v59 = vld [vmem:[%s1771_s3 + $0x10] sm:$0xff]  }
  0x18   : > { %v504_v46 = vpack.c.bf16 %v285_v43, %v282_v45  ;;  %v1424_v60 = vld [vmem:[%s1771_s3 + $0x40] sm:$0xff]   ;;  %v1425_v61 = vld [vmem:[%s1771_s3 + $0x8] sm:$0xff]   ;;  %v1428_v38 = vld [vmem:[%s1771_s3 + $0xb0] sm:$0xff]  }
  0x19   : > { %1263 = vmatpush3.bf16.msra.mxu0 %v1392_v8  ;;  %v1427_v62 = vld [vmem:[%s1771_s3] sm:$0xff]   ;;  %v1429_v43 = vld [vmem:[%s1771_s3 + $0xa8] sm:$0xff]   ;;  %v1432_v45 = vld [vmem:[%s1771_s3 + $0x90] sm:$0xff]  }
  0x1a   : > { %1283 = vmatpush3.bf16.msra.mxu1 %v1393_v9  ;;  %1264 = vmatprep.subr.bf16.mxu0 %v1460_v1 }
  0x1b   : > { %1284 = vmatprep.subr.bf16.mxu1 %v1460_v1 }
  0x1d   : > { %1265 = vmatpush3.bf16.msra.mxu0 %v1394_v11  ;;  %v1129_v11 = vld [vmem:[%s1770_s2] ss:$0 sm:$0xff] }
  0x1e   : > { %1285 = vmatpush3.bf16.msra.mxu1 %v1395_v12  ;;  %1266 = vmatprep.subr.bf16.mxu0 %v1460_v1 }
  0x1f   : > { %1286 = vmatprep.subr.bf16.mxu1 %v1460_v1 }
  0x21   : > { %1267 = vmatpush3.bf16.msra.mxu0 %v1396_v17 }
  0x22   : > { %1287 = vmatpush3.bf16.msra.mxu1 %v1397_v18  ;;  %1268 = vmatprep.subr.bf16.mxu0 %v1460_v1 }
  0x23   : > { %1288 = vmatprep.subr.bf16.mxu1 %v1460_v1 }
  0x25   : > { %1269 = vmatpush3.bf16.msra.mxu0 %v1398_v21 }
  0x26   : > { %1289 = vmatpush3.bf16.msra.mxu1 %v1399_v22  ;;  %1270 = vmatprep.subr.bf16.mxu0 %v1460_v1 }
  0x27   : > { %1290 = vmatprep.subr.bf16.mxu1 %v1460_v1 }
  0x29   : > { %1271 = vmatpush3.bf16.msra.mxu0 %v1400_v25 }
  0x2a   : > { %1291 = vmatpush3.bf16.msra.mxu1 %v1401_v26  ;;  %1296 = vmatprep.subr.bf16.mxu0 %v1460_v1 }
  0x2b   : > { %1316 = vmatprep.subr.bf16.mxu1 %v1460_v1 }
  0x2c   : > { %1273 = vmatmul.mubr.bf16.vlgmr.msra.gmra.mxu0 %v229_v14 }
  0x2d   : > { %1293 = vmatmul.mubr.bf16.vlgmr.msra.gmra.mxu1 %v286_v30  ;;  %1297 = vmatpush3.bf16.msra.mxu0 %v1403_v29 }
  0x2e   : > { %1298 = vmatprep.subr.bf16.mxu0 %v1460_v1  ;;  %1312 = vmatprep.mubr.msk.bf16.mxu0 %vm1461_vm0, %v1460_v1 }
  0x2f   : > { %1332 = vmatprep.mubr.msk.bf16.mxu1 %vm1461_vm0, %v1460_v1  ;;  %1317 = vmatpush3.bf16.msra.mxu1 %v1411_v47 }
  0x30   : > { %1318 = vmatprep.subr.bf16.mxu1 %v1460_v1 }
  0x31   : > { %1299 = vmatpush3.bf16.msra.mxu0 %v1404_v31 }
  0x32   : > { %1300 = vmatprep.subr.bf16.mxu0 %v1460_v1 }
  0x33   : > { %1319 = vmatpush3.bf16.msra.mxu1 %v1412_v48  ;;  %v1433_v48 = vld [vmem:[%s1771_s3 + $0x88] sm:$0xff]  }
  0x34   : > { %1320 = vmatprep.subr.bf16.mxu1 %v1460_v1 }
  0x35   : > { %1301 = vmatpush3.bf16.msra.mxu0 %v1405_v32 }
  0x36   : > { %1302 = vmatprep.subr.bf16.mxu0 %v1460_v1 }
  0x37   : > { %1321 = vmatpush3.bf16.msra.mxu1 %v1414_v50  ;;  %v1434_v50 = vld [vmem:[%s1771_s3 + $0x80] sm:$0xff]  }
  0x38   : > { %1322 = vmatprep.subr.bf16.mxu1 %v1460_v1 }
  0x39   : > { %1303 = vmatpush3.bf16.msra.mxu0 %v1406_v33  ;;  %v1426_v33 = vld [vmem:[%s1771_s3 + $0xb8] sm:$0xff]  }
  0x3a   : > { %1304 = vmatprep.subr.bf16.mxu0 %v1460_v1 }
  0x3b   : > { %1323 = vmatpush3.bf16.msra.mxu1 %v1416_v52 }
  0x3c   : > { %1324 = vmatprep.subr.bf16.mxu1 %v1460_v1 }
  0x3d   : > { %1305 = vmatpush3.bf16.msra.mxu0 %v1407_v35 }
  0x3e   : > { %1306 = vmatprep.subr.bf16.mxu0 %v1460_v1 }
  0x3f   : > { %1325 = vmatpush3.bf16.msra.mxu1 %v1418_v54 }
  0x40   : > { %1326 = vmatprep.subr.bf16.mxu1 %v1460_v1 }
  0x41   : > { %1307 = vmatpush3.bf16.msra.mxu0 %v1408_v39 }
  0x42   : > { %1308 = vmatprep.subr.bf16.mxu0 %v1460_v1 }
  0x43   : > { %1327 = vmatpush3.bf16.msra.mxu1 %v1420_v56 }
  0x44   : > { %1328 = vmatprep.subr.bf16.mxu1 %v1460_v1 }
  0x45   : > { %1309 = vmatpush3.bf16.msra.mxu0 %v1409_v40 }
  0x46   : > { %1310 = vmatprep.subr.bf16.mxu0 %v1460_v1 }
  0x47   : > { %1329 = vmatpush3.bf16.msra.mxu1 %v1422_v58 }
  0x48   : > { %1330 = vmatprep.subr.bf16.mxu1 %v1460_v1 }
  0x49   : > { %1311 = vmatpush3.bf16.msra.mxu0 %v1410_v44  ;;  %v1431_v44 = vld [vmem:[%s1771_s3 + $0x98] sm:$0xff]  }
  0x4a   : > { %1336 = vmatprep.subr.bf16.mxu0 %v1460_v1 }
  0x4b   : > { %1331 = vmatpush3.bf16.msra.mxu1 %v1424_v60 }
  0x4c   : > { %1313 = vmatmul.mubr.bf16.vlgmr.msra.gmra.mxu0 %v504_v46  ;;  %1356 = vmatprep.subr.bf16.mxu1 %v1460_v1 }
  0x4d   : > { %1352 = vmatprep.mubr.msk.bf16.mxu0 %vm1461_vm0, %v1460_v1  ;;  %1337 = vmatpush3.bf16.msra.mxu0 %v1413_v49 }
  0x4e   : > { %1338 = vmatprep.subr.bf16.mxu0 %v1460_v1 }
  0x51   : > { %1339 = vmatpush3.bf16.msra.mxu0 %v1415_v51 }
  0x52   : > { %1340 = vmatprep.subr.bf16.mxu0 %v1460_v1 }
  0x55   : > { %1341 = vmatpush3.bf16.msra.mxu0 %v1417_v53 }
  0x56   : > { %1342 = vmatprep.subr.bf16.mxu0 %v1460_v1 }
  0x59   : > { %1343 = vmatpush3.bf16.msra.mxu0 %v1419_v55 }
  0x5a   : > { %1344 = vmatprep.subr.bf16.mxu0 %v1460_v1 }
  0x5d   : > { %1345 = vmatpush3.bf16.msra.mxu0 %v1421_v57 }
  0x5e   : > { %1346 = vmatprep.subr.bf16.mxu0 %v1460_v1 }
  0x61   : > { %1347 = vmatpush3.bf16.msra.mxu0 %v1423_v59 }
  0x62   : > { %1348 = vmatprep.subr.bf16.mxu0 %v1460_v1 }
  0x65   : > { %1349 = vmatpush3.bf16.msra.mxu0 %v1425_v61 }
  0x66   : > { %1350 = vmatprep.subr.bf16.mxu0 %v1460_v1 }
  0x69   : > { %1351 = vmatpush3.bf16.msra.mxu0 %v1427_v62 }
  0xec   : > { %v408_v63 = vpop.f32.mrf.mxu0 }
  0xed   : > { %v497_v0 = vpop.f32.mrf.mxu1 }
  0xee   : > { %v1274_v2 = vpop.f32.mrf.mxu0  ;;  %v498_v8 = vadd.f32 %v497_v0, %v408_v63 }
  0xef   : > { %v1294_v3 = vpop.f32.mrf.mxu1 }
  0xf0   : > { %v411_v4 = vpop.f32.mrf.mxu0 }
  0xf1   : > { %v500_v5 = vpop.f32.mrf.mxu1 }
  0xf2   : > { %v1275_v6 = vpop.f32.mrf.mxu0  ;;  %v501_v14 = vadd.f32 %v500_v5, %v411_v4 }
  0xf3   : > { %v1295_v7 = vpop.f32.mrf.mxu1 }
 0x10c   : > { %v604_v9 = vpop.f32.mrf.mxu0 }
 0x10d   : > { %v611_v12 = vadd.f32 %v604_v9, %v498_v8 }
 0x10e   : > { %v1314_v13 = vpop.f32.mrf.mxu0 }
 0x10f   : > { %v620_v17 = vadd.f32 %v1129_v11, %v611_v12 }
 0x110   : > { %v607_v18 = vpop.f32.mrf.mxu0 }
 0x111   : > { %v1130_v19 = vmul.f32 -1.442695, %v620_v17  ;;  %v612_v20 = vadd.f32 %v607_v18, %v501_v14 }
 0x112   : > { %v1315_v21 = vpop.f32.mrf.mxu0 }
 0x113   : > { %1436 = vpow2.f32 %v1130_v19  ;;  %v621_v22 = vadd.f32 %v1129_v11, %v612_v20 }
 0x115   : > { %v1131_v24 = vmul.f32 -1.442695, %v621_v22 }
 0x117   : > { %1438 = vpow2.f32 %v1131_v24 }
 0x120   : > { %v1437_v25 = vpop.eup %1436 }
 0x121   : > { %v628_v26 = vadd.f32 1.0, %v1437_v25 }
 0x123   : > { %1440 = vrcp.f32 %v628_v26 }
 0x124   : > { %v1439_v27 = vpop.eup %1438 }
 0x125   : > { %v629_v28 = vadd.f32 1.0, %v1439_v27 }
 0x127   : > { %1442 = vrcp.f32 %v629_v28 }
 0x130   : > { %v1441_v29 = vpop.eup %1440 }
 0x131   : > { %v634_v30 = vmul.f32 %v1441_v29, %v620_v17 }
 0x133   : > { %v636_v34 = vrot.slane %v634_v30, 7  ;;  %v642_v47 = vrot.slane %v634_v30, 1 }
 0x134   : > { %v1443_v31 = vpop.eup %1442 }
 0x135   : > { %v635_v32 = vmul.f32 %v1443_v31, %v621_v22 }
 0x137   : > { %v637_v35 = vrot.slane %v635_v32, 7  ;;  %v665_v36 = vpack.c.bf16 %v635_v32, %v634_v30  ;;  %v643_v46 = vrot.slane %v635_v32, 1 }
 0x139   : > { %1333 = vmatmul.mubr.bf16.vlgmr.msra.gmra.mxu1 %v665_v36  ;;  %v639_v37 = vsel %vm274_vm2, %v637_v35, %v636_v34  ;;  %v638_v40 = vsel %vm274_vm2, %v636_v34, %v637_v35  ;;  %v645_v49 = vsel %vm281_vm4, %v643_v46, %v642_v47  ;;  %v644_v52 = vsel %vm281_vm4, %v642_v47, %v643_v46 }
 0x13a   : > { %1357 = vmatpush3.bf16.msra.mxu1 %v1426_v33  ;;  %v640_v39 = vmul.f32 %v1578_v23, %v639_v37  ;;  %1372 = vmatprep.mubr.msk.bf16.mxu1 %vm1461_vm0, %v1460_v1  ;;  %v1430_v23 = vld [vmem:[%s1771_s3 + $0xa0] sm:$0xff]   ;;  %v647_v51 = vmul.f32 %v1631_v41, %v645_v49 }
 0x13b   : > { %1358 = vmatprep.subr.bf16.mxu1 %v1460_v1 }
 0x13c   : > { %v648_v42 = vpack.c.bf16 %v638_v40, %v640_v39  ;;  %v861_v53 = vpack.c.bf16 %v647_v51, %v644_v52 }
 0x13e   : > { %1359 = vmatpush3.bf16.msra.mxu1 %v1428_v38  ;;  %1353 = vmatmul.mubr.bf16.vlgmr.msra.gmra.mxu0 %v648_v42 }
 0x13f   : > { %1360 = vmatprep.subr.bf16.mxu1 %v1460_v1 }
 0x142   : > { %1361 = vmatpush3.bf16.msra.mxu1 %v1429_v43 }
 0x143   : > { %1362 = vmatprep.subr.bf16.mxu1 %v1460_v1 }
 0x146   : > { %1363 = vmatpush3.bf16.msra.mxu1 %v1430_v23 }
 0x147   : > { %1364 = vmatprep.subr.bf16.mxu1 %v1460_v1 }
 0x14a   : > { %1365 = vmatpush3.bf16.msra.mxu1 %v1431_v44 }
 0x14b   : > { %1366 = vmatprep.subr.bf16.mxu1 %v1460_v1 }
 0x14e   : > { %1367 = vmatpush3.bf16.msra.mxu1 %v1432_v45 }
 0x14f   : > { %1368 = vmatprep.subr.bf16.mxu1 %v1460_v1 }
 0x152   : > { %1369 = vmatpush3.bf16.msra.mxu1 %v1433_v48 }
 0x153   : > { %1370 = vmatprep.subr.bf16.mxu1 %v1460_v1  ;;  %v1188_v1 = vld [vmem:[%s1772_s4] ss:$0 sm:$0xff] }
 0x156   : > { %1371 = vmatpush3.bf16.msra.mxu1 %v1434_v50 }
 0x159   : > { %1373 = vmatmul.mubr.bf16.vlgmr.msra.gmra.mxu1 %v861_v53 }
 0x1f9   : > { %v765_v54 = vpop.f32.mrf.mxu1 }
 0x1fb   : > { %v1334_v55 = vpop.f32.mrf.mxu1 }
 0x1fd   : > { %v768_v56 = vpop.f32.mrf.mxu1 }
 0x1fe   : > { %v854_v57 = vpop.f32.mrf.mxu0 }
 0x1ff   : > { %v1335_v58 = vpop.f32.mrf.mxu1  ;;  %v855_v62 = vadd.f32 %v854_v57, %v765_v54 }
 0x200   : > { %v1354_v59 = vpop.f32.mrf.mxu0 }
 0x202   : > { %v857_v60 = vpop.f32.mrf.mxu0 }
 0x203   : > { %v858_v10 = vadd.f32 %v857_v60, %v768_v56 }
 0x204   : > { %v1355_v61 = vpop.f32.mrf.mxu0 }
 0x219   : > { %v961_v63 = vpop.f32.mrf.mxu1 }
 0x21a   : > { %v968_v41 = vadd.f32 %v961_v63, %v855_v62 }
 0x21b   : > { %v1374_v0 = vpop.f32.mrf.mxu1 }
 0x21c   : > { %v977_v2 = vadd.f32 %v1188_v1, %v968_v41 }
 0x21d   : > { %v964_v3 = vpop.f32.mrf.mxu1 }
 0x21e   : > { %v1189_v4 = vmul.f32 -1.442695, %v977_v2  ;;  %v969_v5 = vadd.f32 %v964_v3, %v858_v10 }
 0x21f   : > { %v1375_v6 = vpop.f32.mrf.mxu1 }
 0x220   : > { %1444 = vpow2.f32 %v1189_v4  ;;  %v978_v7 = vadd.f32 %v1188_v1, %v969_v5 }
 0x222   : > { %v1190_v8 = vmul.f32 -1.442695, %v978_v7 }
 0x224   : > { %1446 = vpow2.f32 %v1190_v8 }
 0x22d   : > { %v1445_v9 = vpop.eup %1444 }
 0x22e   : > { %v985_v11 = vadd.f32 1.0, %v1445_v9 }
 0x230   : > { %1448 = vrcp.f32 %v985_v11 }
 0x231   : > { %v1447_v12 = vpop.eup %1446 }
 0x232   : > { %v986_v13 = vadd.f32 1.0, %v1447_v12 }
 0x234   : > { %1450 = vrcp.f32 %v986_v13 }
 0x23d   : > { %v1449_v14 = vpop.eup %1448 }
 0x23e   : > { %v991_v17 = vmul.f32 %v1449_v14, %v977_v2 }
 0x240   : > { %v993_v20 = vadd.f32 %v991_v17, %v1555_v15 }
 0x241   : > { %v1451_v18 = vpop.eup %1450 }
 0x242   : > { %v992_v19 = vmul.f32 %v1451_v18, %v978_v7 }
 0x244   : > { %v994_v21 = vadd.f32 %v992_v19, %v1557_v16 }
 0x246   : > { %v1200_v22 = vpack.c.bf16 %v994_v21, %v993_v20 }
 0x248   : > { %1201 = vst [vmem:[%s226_s14] sm:$0xff] %v1200_v22  }
 0x249 PF: > { %s15_s18 = sadd.s32 1, %s1458_s18  }
 0x24a   : > { %p12_p4 = scmp.ge.s32.totalorder %s15_s18, 4  }
 0x24c   :  { %14 = sbr.rel (!%p12_p4) target bundleno = 1 (0x1), region = 74 }

</bundles_post_ra>
